<compile_context>
chip_gen: v6e
topology: v6e:2x2x1
jax: 0.10.0
libtpu: 0.0.40
codegen_flags: <defaults>
</compile_context>

<pallas_src>
import jax
import jax.numpy as jnp
from jax.experimental import pallas as pl
from jax.experimental.pallas import tpu as pltpu

IN_FEATURES = 28 * 28     # 784
H1 = 128
H2 = 256
OUT = 10
OUT_PAD = 128             # lane-dense output block; real logits are [:, :10]


def _round_up(n, m):
    return ((n + m - 1) // m) * m


def _mlp_kernel(x_ref, w1_ref, b1_ref, w2_ref, b2_ref, w3_ref, b3_ref, o_ref):
    # x arrives as f32 straight from HBM; cast to bf16 on the VPU right before
    # the MXU.  Accumulate in f32; bias-add + ReLU stay f32 (v5e has no bf16
    # VPU path), re-cast to bf16 before the next dot.
    x = x_ref[...].astype(jnp.bfloat16)                              # (TB, 784)
    h1 = jnp.dot(x, w1_ref[...], preferred_element_type=jnp.float32) + b1_ref[...]
    h1 = jnp.maximum(h1, 0.0).astype(jnp.bfloat16)                   # (TB, 128)
    h2 = jnp.dot(h1, w2_ref[...], preferred_element_type=jnp.float32) + b2_ref[...]
    h2 = jnp.maximum(h2, 0.0).astype(jnp.bfloat16)                   # (TB, 256)
    o_ref[...] = (jnp.dot(h2, w3_ref[...], preferred_element_type=jnp.float32)
                  + b3_ref[...])                                     # (TB, 128) f32


def backbone_forward(x_nchw, params, *, tb=512):
    """x_nchw: (B, C, H, W) with C*H*W == 784. Returns (B, 10) float32."""
    b = x_nchw.shape[0]
    w1, b1, w2, b2, w3, b3 = params

    # torch: x.view(batch, -1) -- row-major NCHW flatten; a free bitcast.
    x2d = x_nchw.reshape(b, -1)
    assert x2d.shape[1] == IN_FEATURES
    x2d = x2d.astype(jnp.float32)          # no-op when input is already f32

    # Batch tile: multiple of 8 sublanes, <= tb, and chosen so there are at
    # least 2 grid steps once b > 8 (keeps both v7x TensorCores busy; on
    # v5e/v6e the split is harmless).  Ragged last tile is masked by Pallas.
    tb_eff = max(8, min(tb, _round_up(pl.cdiv(b, 2), 8)))
    n_tiles = pl.cdiv(b, tb_eff)

    # Weights: bf16 MXU operands (no K padding needed: 784 rows = 49*16
    # sublanes is fine for bf16); only the tiny last layer is lane-padded.
    # Zero padding keeps the math identical (extra OUT cols are 0).
    w1p = w1.astype(jnp.bfloat16)                                         # (784, 128)
    w2p = w2.astype(jnp.bfloat16)                                         # (128, 256)
    w3p = jnp.pad(w3, ((0, 0), (0, OUT_PAD - OUT))).astype(jnp.bfloat16)  # (256, 128)
    b1p = b1.astype(jnp.float32)
    b2p = b2.astype(jnp.float32)
    b3p = jnp.pad(b3, ((0, 0), (0, OUT_PAD - OUT))).astype(jnp.float32)

    # Constant index_map => weights/biases stay VMEM-resident across batch tiles.
    resident = lambda shape: pl.BlockSpec(shape, lambda i: (0, 0))

    flops = 2 * b * (IN_FEATURES * H1 + H1 * H2 + H2 * OUT)
    bytes_accessed = int(
        b * IN_FEATURES * 4                         # x (f32, read once)
        + (w1p.size + w2p.size + w3p.size) * 2      # bf16 weights
        + (b1p.size + b2p.size + b3p.size) * 4      # f32 biases
        + b * OUT_PAD * 4                           # f32 logits slab
    )

    out = pl.pallas_call(
        _mlp_kernel,
        out_shape=jax.ShapeDtypeStruct((b, OUT_PAD), jnp.float32),
        grid=(n_tiles,),
        in_specs=[
            pl.BlockSpec((tb_eff, IN_FEATURES), lambda i: (i, 0)),  # x: tiled over batch
            resident((IN_FEATURES, H1)), resident((1, H1)),
            resident((H1, H2)),          resident((1, H2)),
            resident((H2, OUT_PAD)),     resident((1, OUT_PAD)),
        ],
        out_specs=pl.BlockSpec((tb_eff, OUT_PAD), lambda i: (i, 0)),
        compiler_params=pltpu.CompilerParams(
            dimension_semantics=("parallel",),      # batch tiles shard across TCs (v7x)
        ),
        cost_estimate=pl.CostEstimate(
            flops=flops, transcendentals=0, bytes_accessed=bytes_accessed),
    )(x2d, w1p, b1p, w2p, b2p, w3p, b3p)

    # TODO(synk): fuse this lane-slice into the consumer (or emit bf16 logits)
    # if the extra pass over the small (B, 128) slab ever matters.
    return out[:, :OUT]


def init_params(key):
    """Deterministic init mirroring nn.Linear default (U[-1/sqrt(fan_in), +])."""
    ks = jax.random.split(key, 6)

    def linear(kw, kb, fan_in, fan_out):
        bound = 1.0 / jnp.sqrt(fan_in)
        # Stored already transposed: (in, out), so the kernel does x @ W.
        w = jax.random.uniform(kw, (fan_in, fan_out), jnp.float32, -bound, bound)
        b = jax.random.uniform(kb, (1, fan_out), jnp.float32, -bound, bound)
        return w, b

    w1, b1 = linear(ks[0], ks[1], IN_FEATURES, H1)
    w2, b2 = linear(ks[2], ks[3], H1, H2)
    w3, b3 = linear(ks[4], ks[5], H2, OUT)
    return (w1, b1, w2, b2, w3, b3)


if __name__ == "__main__":
    key = jax.random.PRNGKey(0)
    k_x, k_p = jax.random.split(key)

    # NCHW with C*H*W == 28*28 (MNIST-like), small demo batch.
    x = jax.random.normal(k_x, (2, 1, 28, 28), dtype=jnp.float32)
    params = init_params(k_p)

    out = backbone_forward(x, params)
    out = jax.block_until_ready(out)

    # Reference in plain JAX (f32 math).  Kernel uses bf16 MXU operands with
    # f32 accumulation, so compare with a tolerance that covers bf16 rounding.
    w1, b1, w2, b2, w3, b3 = params
    xf = x.reshape(x.shape[0], -1)
    ref = jnp.maximum(xf @ w1 + b1, 0.0)
    ref = jnp.maximum(ref @ w2 + b2, 0.0)
    ref = ref @ w3 + b3

    assert out.shape == (2, OUT)
    assert jnp.allclose(out, ref, atol=3e-2, rtol=3e-2), (
        float(jnp.max(jnp.abs(out - ref))))

    print("KERNEL_OK")
</pallas_src>

<mosaic_0001>
module attributes {stable_mosaic.version = 11 : i64} {
  func.func @_mlp_kernel(%arg0: i32, %arg1: memref<8x784xf32, #tpu.memory_space<vmem>>, %arg2: memref<784x128xbf16, #tpu.memory_space<vmem>>, %arg3: memref<1x128xf32, #tpu.memory_space<vmem>>, %arg4: memref<128x256xbf16, #tpu.memory_space<vmem>>, %arg5: memref<1x256xf32, #tpu.memory_space<vmem>>, %arg6: memref<256x128xbf16, #tpu.memory_space<vmem>>, %arg7: memref<1x128xf32, #tpu.memory_space<vmem>>, %arg8: memref<8x128xf32, #tpu.memory_space<vmem>>) attributes {dimension_semantics = [#tpu.dimension_semantics<parallel>], iteration_bounds = array<i64: 1>, scalar_prefetch = 0 : i64, scratch_operands = 0 : i64, tpu.core_type = #tpu.core_type<tc>, window_params = [{transform_indices = @transform_0, window_bounds = array<i64: 8, 784>}, {pipeline_mode = #tpu.pipeline_mode<synchronous>, transform_indices = @transform_1, window_bounds = array<i64: 784, 128>}, {pipeline_mode = #tpu.pipeline_mode<synchronous>, transform_indices = @transform_2, window_bounds = array<i64: 1, 128>}, {pipeline_mode = #tpu.pipeline_mode<synchronous>, transform_indices = @transform_3, window_bounds = array<i64: 128, 256>}, {pipeline_mode = #tpu.pipeline_mode<synchronous>, transform_indices = @transform_4, window_bounds = array<i64: 1, 256>}, {pipeline_mode = #tpu.pipeline_mode<synchronous>, transform_indices = @transform_5, window_bounds = array<i64: 256, 128>}, {pipeline_mode = #tpu.pipeline_mode<synchronous>, transform_indices = @transform_6, window_bounds = array<i64: 1, 128>}, {transform_indices = @transform_7, window_bounds = array<i64: 8, 128>}]} {
    %c0 = arith.constant 0 : index
    %c0_0 = arith.constant 0 : index
    %0 = vector.load %arg1[%c0, %c0_0] : memref<8x784xf32, #tpu.memory_space<vmem>>, vector<8x784xf32>
    %1 = arith.truncf %0 : vector<8x784xf32> to vector<8x784xbf16>
    %c0_1 = arith.constant 0 : index
    %c0_2 = arith.constant 0 : index
    %2 = vector.load %arg2[%c0_1, %c0_2] : memref<784x128xbf16, #tpu.memory_space<vmem>>, vector<784x128xbf16>
    %cst = arith.constant dense<0.000000e+00> : vector<8x128xf32>
    %3 = tpu.matmul %1, %2, %cst {dimension_numbers = #tpu.dot_dimension_numbers<[1], [0], [0], [1], [0, 0, 1, 1], [], []>} : vector<8x784xbf16>, vector<784x128xbf16>, vector<8x128xf32> -> vector<8x128xf32>
    %c0_3 = arith.constant 0 : index
    %c0_4 = arith.constant 0 : index
    %4 = vector.load %arg3[%c0_3, %c0_4] : memref<1x128xf32, #tpu.memory_space<vmem>>, vector<1x128xf32>
    %5 = vector.broadcast %4 : vector<1x128xf32> to vector<8x128xf32>
    %6 = arith.addf %3, %5 : vector<8x128xf32>
    %cst_5 = arith.constant 0.000000e+00 : f32
    %7 = vector.broadcast %cst_5 : f32 to vector<8x128xf32>
    %8 = arith.maximumf %6, %7 : vector<8x128xf32>
    %9 = arith.truncf %8 : vector<8x128xf32> to vector<8x128xbf16>
    %c0_6 = arith.constant 0 : index
    %c0_7 = arith.constant 0 : index
    %10 = vector.load %arg4[%c0_6, %c0_7] : memref<128x256xbf16, #tpu.memory_space<vmem>>, vector<128x256xbf16>
    %cst_8 = arith.constant dense<0.000000e+00> : vector<8x256xf32>
    %11 = tpu.matmul %9, %10, %cst_8 {dimension_numbers = #tpu.dot_dimension_numbers<[1], [0], [0], [1], [0, 0, 1, 1], [], []>} : vector<8x128xbf16>, vector<128x256xbf16>, vector<8x256xf32> -> vector<8x256xf32>
    %c0_9 = arith.constant 0 : index
    %c0_10 = arith.constant 0 : index
    %12 = vector.load %arg5[%c0_9, %c0_10] : memref<1x256xf32, #tpu.memory_space<vmem>>, vector<1x256xf32>
    %13 = vector.broadcast %12 : vector<1x256xf32> to vector<8x256xf32>
    %14 = arith.addf %11, %13 : vector<8x256xf32>
    %cst_11 = arith.constant 0.000000e+00 : f32
    %15 = vector.broadcast %cst_11 : f32 to vector<8x256xf32>
    %16 = arith.maximumf %14, %15 : vector<8x256xf32>
    %17 = arith.truncf %16 : vector<8x256xf32> to vector<8x256xbf16>
    %c0_12 = arith.constant 0 : index
    %c0_13 = arith.constant 0 : index
    %18 = vector.load %arg6[%c0_12, %c0_13] : memref<256x128xbf16, #tpu.memory_space<vmem>>, vector<256x128xbf16>
    %cst_14 = arith.constant dense<0.000000e+00> : vector<8x128xf32>
    %19 = tpu.matmul %17, %18, %cst_14 {dimension_numbers = #tpu.dot_dimension_numbers<[1], [0], [0], [1], [0, 0, 1, 1], [], []>} : vector<8x256xbf16>, vector<256x128xbf16>, vector<8x128xf32> -> vector<8x128xf32>
    %c0_15 = arith.constant 0 : index
    %c0_16 = arith.constant 0 : index
    %20 = vector.load %arg7[%c0_15, %c0_16] : memref<1x128xf32, #tpu.memory_space<vmem>>, vector<1x128xf32>
    %21 = vector.broadcast %20 : vector<1x128xf32> to vector<8x128xf32>
    %22 = arith.addf %19, %21 : vector<8x128xf32>
    %c0_17 = arith.constant 0 : index
    %c0_18 = arith.constant 0 : index
    %23 = vector.load %arg8[%c0_17, %c0_18] : memref<8x128xf32, #tpu.memory_space<vmem>>, vector<8x128xf32>
    tpu.vector_store %arg8[%c0_17, %c0_18], %22 {strides = array<i32>} : memref<8x128xf32, #tpu.memory_space<vmem>>, vector<8x128xf32>,
    return
  }
  func.func @transform_0(%arg0: i32) -> (i32, i32) {
    %c0_i32 = arith.constant 0 : i32
    %c0_i32_0 = arith.constant 0 : i32
    return %arg0, %c0_i32 : i32, i32
  }
  func.func @transform_1(%arg0: i32) -> (i32, i32) {
    %c0_i32 = arith.constant 0 : i32
    %c0_i32_0 = arith.constant 0 : i32
    %c0_i32_1 = arith.constant 0 : i32
    return %c0_i32, %c0_i32_0 : i32, i32
  }
  func.func @transform_2(%arg0: i32) -> (i32, i32) {
    %c0_i32 = arith.constant 0 : i32
    %c0_i32_0 = arith.constant 0 : i32
    %c0_i32_1 = arith.constant 0 : i32
    return %c0_i32, %c0_i32_0 : i32, i32
  }
  func.func @transform_3(%arg0: i32) -> (i32, i32) {
    %c0_i32 = arith.constant 0 : i32
    %c0_i32_0 = arith.constant 0 : i32
    %c0_i32_1 = arith.constant 0 : i32
    return %c0_i32, %c0_i32_0 : i32, i32
  }
  func.func @transform_4(%arg0: i32) -> (i32, i32) {
    %c0_i32 = arith.constant 0 : i32
    %c0_i32_0 = arith.constant 0 : i32
    %c0_i32_1 = arith.constant 0 : i32
    return %c0_i32, %c0_i32_0 : i32, i32
  }
  func.func @transform_5(%arg0: i32) -> (i32, i32) {
    %c0_i32 = arith.constant 0 : i32
    %c0_i32_0 = arith.constant 0 : i32
    %c0_i32_1 = arith.constant 0 : i32
    return %c0_i32, %c0_i32_0 : i32, i32
  }
  func.func @transform_6(%arg0: i32) -> (i32, i32) {
    %c0_i32 = arith.constant 0 : i32
    %c0_i32_0 = arith.constant 0 : i32
    %c0_i32_1 = arith.constant 0 : i32
    return %c0_i32, %c0_i32_0 : i32, i32
  }
  func.func @transform_7(%arg0: i32) -> (i32, i32) {
    %c0_i32 = arith.constant 0 : i32
    %c0_i32_0 = arith.constant 0 : i32
    return %arg0, %c0_i32 : i32, i32
  }
}

</mosaic_0001>

<bundles_post_ra>
// kernel: tpu_custom_call.1
= control target key start
LH: loop header
LB: loop body
LE: loop exit
PB: predicated region body
PF: predicated region fallthrough
CT: control target
= control target key end

     0   :  { %12 = vsyncpa [#allocation3], 0  ;;  %s1605_s0 = inlined_call_operand.hbm [shape: f32[2,784], index: 0, kind: input, shape index: {}]   ;;  %s1606_s1 = inlined_call_operand.hbm [shape: bf16[784,128], index: 1, kind: input, shape index: {}]   ;;  %s1607_s2 = inlined_call_operand.vmem [shape: f32[1,128], index: 2, kind: input, shape index: {}]   ;;  %s1608_s3 = inlined_call_operand.hbm [shape: bf16[128,256], index: 3, kind: input, shape index: {}]   ;;  %s1609_s4 = inlined_call_operand.vmem [shape: f32[1,256], index: 4, kind: input, shape index: {}]   ;;  %s1610_s5 = inlined_call_operand.hbm [shape: bf16[256,128], index: 5, kind: input, shape index: {}]   ;;  %s1611_s6 = inlined_call_operand.vmem [shape: f32[1,128], index: 6, kind: input, shape index: {}]   ;;  %s1612_s7 = inlined_call_operand.hbm [shape: f32[2,128], index: 7, kind: output, shape index: {}]  }
   0x1   :  { %13 = vsyncpa [#allocation6], 0 }
   0x2   :  { %14 = vsyncpa [#allocation9], 0 }
   0x3   :  { %15 = vsyncpa [#allocation4], 0 }
   0x4   :  { %20 = vsyncadd [#allocation3], 672  ;;  %s1503_s24 = smov [#allocation5]  }
   0x5   :  { %s33_s25 = sshll.u32 %s1503_s24, 4  ;;  %s34_s25 = int_to_ptr.vmem [resolvable:$true] %s33_s25 }
   0x6   :  { %s1403_s26 = scalar_lea.vmem %s34_s25, 6272  ;;  %p1408_p1 = scmp.lt.s32.totalorder %s34_s25, %s34_s25 }
   0x7   :  { %p1404_p0 = scmp.ne.s32.totalorder %s34_s25, %s1403_s26  ;;  %p1409_p2 = scmp.lt.s32.totalorder %s1403_s26, %s1403_s26 }
   0x9   :  { %p1410_p3 = por %p1409_p2, %p1408_p1 }
   0xb   :  { %p1411_p4 = pnand %p1410_p3, %p1404_p0 }
   0xd   :  { %1414 = shalt.err (!%p1411_p4)
}
   0xe   :  { %s1504_s27 = smov 64   ;;  %s1505_s28 = smov 4  }
   0xf   :  { %39 = dma.hbm_to_vmem [thread:$0]  %s1606_s1, 6272, %s34_s25, [#allocation6], %s1504_s27, %s1504_s27, %s1505_s28  }
  0x10   :  { %s1506_s8 = smov [#allocation2]  }
  0x11   :  { %s21_s9 = sshll.u32 %s1506_s8, 4  ;;  %s22_s9 = int_to_ptr.vmem [resolvable:$true] %s21_s9 }
  0x12   :  { %s1423_s10 = scalar_lea.vmem %s22_s9, 224  ;;  %s1427_s11 = scalar_lea.vmem %s22_s9, 896 }
  0x13   :  { %p1424_p5 = scmp.ne.s32.totalorder %s22_s9, %s1423_s10  ;;  %p1428_p6 = scmp.lt.s32.totalorder %s22_s9, %s22_s9 }
  0x14   :  { %p1429_p7 = scmp.lt.s32.totalorder %s1427_s11, %s1423_s10 }
  0x16   :  { %p1430_p8 = por %p1429_p7, %p1428_p6 }
  0x18   :  { %p1431_p9 = pnand %p1430_p8, %p1424_p5 }
  0x1a   :  { %1434 = shalt.err (!%p1431_p9)
}
  0x1b   :  { %s1507_s12 = smov 224   ;;  %s1508_s13 = smov 14  }
  0x1c   :  { %27 = dma.hbm_to_vmem [thread:$0]  %s1605_s0, 224, %s22_s9, [#allocation3], %s1507_s12, %s1507_s12, %s1508_s13  }
  0x1d   :  { %s1509_s16 = smov [#allocation7]  }
  0x1e   :  { %s47_s17 = sshll.u32 %s1509_s16, 4  ;;  %s48_s17 = int_to_ptr.vmem [resolvable:$true] %s47_s17 }
  0x1f   :  { %s1443_s1 = scalar_lea.vmem %s48_s17, 2048  ;;  %p1448_p11 = scmp.lt.s32.totalorder %s48_s17, %s48_s17 }
  0x20   :  { %p1444_p10 = scmp.ne.s32.totalorder %s48_s17, %s1443_s1  ;;  %p1449_p12 = scmp.lt.s32.totalorder %s1443_s1, %s1443_s1 }
  0x22   :  { %p1450_p13 = por %p1449_p12, %p1448_p11 }
  0x24   :  { %p1451_p0 = pnand %p1450_p13, %p1444_p10 }
  0x26   :  { %1454 = shalt.err (!%p1451_p0)
}
  0x27   :  { %s1510_s18 = smov 128   ;;  %s1511_s19 = smov 8  }
  0x28   :  { %53 = dma.hbm_to_vmem [thread:$0]  %s1608_s3, 2048, %s48_s17, [#allocation6], %s1510_s18, %s1510_s18, %s1511_s19  }
  0x29   :  { %s1512_s22 = smov [#allocation8]  }
  0x2a   :  { %s61_s23 = sshll.u32 %s1512_s22, 4  ;;  %s62_s23 = int_to_ptr.vmem [resolvable:$true] %s61_s23 }
  0x2b   :  { %s1463_s0 = scalar_lea.vmem %s62_s23, 2048  ;;  %p1468_p2 = scmp.lt.s32.totalorder %s62_s23, %s62_s23 }
  0x2c   :  { %p1464_p1 = scmp.ne.s32.totalorder %s62_s23, %s1463_s0  ;;  %p1469_p3 = scmp.lt.s32.totalorder %s1463_s0, %s1463_s0 }
  0x2e   :  { %p1470_p4 = por %p1469_p3, %p1468_p2 }
  0x30   :  { %p1471_p5 = pnand %p1470_p4, %p1464_p1 }
  0x32   :  { %1474 = shalt.err (!%p1471_p5)
}
  0x33   :  { %67 = dma.hbm_to_vmem [thread:$0]  %s1610_s5, 2048, %s62_s23, [#allocation9], %s1504_s27, %s1504_s27, %s1505_s28  }
  0x34   :  { %1495 = dma.done.wait [#allocation3], 896  }
  0x35   :  { %1496 = vsyncadd [#allocation3], 4294966400 }
  0x36   :  { %1497 = dma.done.wait [#allocation6], 8320  }
  0x37   :  { %1498 = vsyncadd [#allocation6], 4294958976 }
  0x38   :  { %1499 = dma.done.wait [#allocation9], 2048  }
  0x39   :  { %1500 = vsyncadd [#allocation9], 4294965248  ;;  %v1294_v0 = vld [vmem:[#allocation5 + $0x78] sm:$0xff]   ;;  %v1298_v4 = vld [vmem:[#allocation5 + $0x70] sm:$0xff]   ;;  %v1513_v23 = vmov 1983009808   ;;  %v106_v25 = vlaneseq }
  0x3a   :  { %v1295_v1 = vld [vmem:[#allocation5 + $0x38] sm:$0xff]   ;;  %1181 = vmatprep.subr.bf16.mxu0 %v1294_v0  ;;  %v1299_v5 = vld [vmem:[#allocation5 + $0x30] sm:$0xff]   ;;  %v1302_v8 = vld [vmem:[#allocation5 + $0x68] sm:$0xff]   ;;  %v104_v24 = vunpack.c.l.s4 %v1513_v23  ;;  %v1514_v47 = vmov 0.0   ;;  %vm1515_vm0 = vmmov 0   ;;  %vm583_vm1 = vcmask 130048  }
  0x3b   :  { %v1296_v2 = vld [vmem:[#allocation5 + $0xf8] sm:$0xff]   ;;  %1182 = vmatpush3.bf16.msra.mxu0 %v1295_v1  ;;  %v1300_v6 = vld [vmem:[#allocation5 + $0xf0] sm:$0xff]   ;;  %v1303_v9 = vld [vmem:[#allocation5 + $0x28] sm:$0xff]   ;;  %v1578_v31 = vshrl.u32 %v106_v25, 7 }
  0x3c   :  { %v1297_v3 = vld [vmem:[#allocation5 + $0xb8] sm:$0xff]   ;;  %1203 = vmatprep.subr.bf16.mxu1 %v1296_v2  ;;  %1183 = vmatprep.subr.bf16.mxu0 %v1298_v4  ;;  %v1301_v7 = vld [vmem:[#allocation5 + $0xb0] sm:$0xff]   ;;  %v1304_v10 = vld [vmem:[#allocation5 + $0xe8] sm:$0xff]   ;;  %v105_v30 = vunpack.c.0.s8 %v104_v24 }
  0x3d   :  { %1204 = vmatpush3.bf16.msra.mxu1 %v1297_v3  ;;  %v1305_v11 = vld [vmem:[#allocation5 + $0xa8] sm:$0xff]   ;;  %v1306_v12 = vld [vmem:[#allocation5 + $0x60] sm:$0xff]   ;;  %v1310_v16 = vld [vmem:[#allocation5 + $0x58] sm:$0xff]  }
  0x3e   :  { %1205 = vmatprep.subr.bf16.mxu1 %v1300_v6  ;;  %v1307_v13 = vld [vmem:[#allocation5 + $0x20] sm:$0xff]   ;;  %v1311_v17 = vld [vmem:[#allocation5 + $0x18] sm:$0xff]   ;;  %v1314_v20 = vld [vmem:[#allocation5 + $0x50] sm:$0xff]   ;;  %v1581_v36 = vsub.s32 %v105_v30, %v1578_v31 }
  0x3f   :  { %1184 = vmatpush3.bf16.msra.mxu0 %v1299_v5  ;;  %v1308_v14 = vld [vmem:[#allocation5 + $0xe0] sm:$0xff]   ;;  %v1312_v18 = vld [vmem:[#allocation5 + $0xd8] sm:$0xff]   ;;  %v1315_v21 = vld [vmem:[#allocation5 + $0x10] sm:$0xff]  }
  0x40   :  { %1185 = vmatprep.subr.bf16.mxu0 %v1302_v8  ;;  %v1309_v15 = vld [vmem:[#allocation5 + $0xa0] sm:$0xff]   ;;  %v1313_v19 = vld [vmem:[#allocation5 + $0x98] sm:$0xff]   ;;  %v1316_v22 = vld [vmem:[#allocation5 + $0xd0] sm:$0xff]  }
  0x41   :  { %1206 = vmatpush3.bf16.msra.mxu1 %v1301_v7  ;;  %v1317_v26 = vld [vmem:[#allocation5 + $0x90] sm:$0xff]   ;;  %v1318_v27 = vld [vmem:[#allocation5 + $0x48] sm:$0xff]   ;;  %v1322_v33 = vld [vmem:[#allocation5 + $0x40] sm:$0xff]  }
  0x42   :  { %1207 = vmatprep.subr.bf16.mxu1 %v1304_v10  ;;  %v1319_v28 = vld [vmem:[#allocation5 + $0x8] sm:$0xff]   ;;  %v1323_v34 = vld [vmem:[#allocation5] sm:$0xff]   ;;  %v1330_v42 = vld [vmem:[#allocation5 + $0x178] sm:$0xff]  }
  0x43   :  { %1186 = vmatpush3.bf16.msra.mxu0 %v1303_v9  ;;  %v1320_v29 = vld [vmem:[#allocation5 + $0xc8] sm:$0xff]   ;;  %v1324_v35 = vld [vmem:[#allocation5 + $0xc0] sm:$0xff]   ;;  %v1333_v52 = vld [vmem:[#allocation5 + $0x138] sm:$0xff]  }
  0x44   :  { %1187 = vmatprep.subr.bf16.mxu0 %v1306_v12  ;;  %v1321_v32 = vld [vmem:[#allocation5 + $0x88] sm:$0xff]   ;;  %v1327_v38 = vld [vmem:[#allocation2 + $0x1c] ss:$14 sps:$4 sm:$0xff]   ;;  %v1340_v63 = vld [vmem:[#allocation5 + $0x158] sm:$0xff]  }
  0x45   :  { %1208 = vmatpush3.bf16.msra.mxu1 %v1305_v11  ;;  %v1325_v37 = vld [vmem:[#allocation2] ss:$14 sps:$4 sm:$0xff]   ;;  %v1329_v39 = vld [vmem:[#allocation5 + $0x80] sm:$0xff]   ;;  %v123_v41 = vrot.slane %v1327_v38, %v1581_v36  ;;  %v1331_v43 = vld [vmem:[#allocation2 + $0x4] ss:$14 sps:$4 sm:$0xff]  }
  0x46   :  { %1209 = vmatprep.subr.bf16.mxu1 %v1308_v14  ;;  %v109_v40 = vrot.slane %v1325_v37, %v1581_v36  ;;  %v1332_v44 = vld [vmem:[#allocation2 + $0x20] ss:$14 sps:$4 sm:$0xff]   ;;  %v116_v48 = vrot.slane %v1331_v43, %v1581_v36  ;;  %v1338_v61 = vld [vmem:[#allocation5 + $0x160] sm:$0xff]   ;;  %v1352_v5 = vld [vmem:[#allocation2 + $0x24] ss:$14 sps:$4 sm:$0xff]  }
  0x47   :  { %1188 = vmatpush3.bf16.msra.mxu0 %v1307_v13  ;;  %v130_v49 = vrot.slane %v1332_v44, %v1581_v36  ;;  %v1334_v55 = vld [vmem:[#allocation5 + $0x170] sm:$0xff]   ;;  %v1336_v59 = vld [vmem:[#allocation5 + $0x168] sm:$0xff]   ;;  %v1339_v62 = vld [vmem:[#allocation5 + $0x120] sm:$0xff]   ;;  %v159_v10 = vrot.slane %v1352_v5, %v1581_v36 }
  0x48   :  { %1189 = vmatprep.subr.bf16.mxu0 %v1310_v16  ;;  %v132_v45 = vcombine.high %v109_v40, %v123_v41  ;;  %v131_v46 = vcombine.low %v109_v40, %v123_v41  ;;  %v1335_v58 = vld [vmem:[#allocation5 + $0x130] sm:$0xff]   ;;  %v1337_v60 = vld [vmem:[#allocation5 + $0x128] sm:$0xff]   ;;  %v1348_v0 = vld [vmem:[#allocation5 + $0x180] sm:$0xff]  }
  0x49   :  { %1210 = vmatpush3.bf16.msra.mxu1 %v1309_v15  ;;  %v134_v53 = vcombine.high %v116_v48, %v130_v49  ;;  %v133_v54 = vcombine.low %v116_v48, %v130_v49  ;;  %v1341_v1 = vld [vmem:[#allocation5 + $0x118] sm:$0xff]   ;;  %v1342_v2 = vld [vmem:[#allocation5 + $0x150] sm:$0xff]   ;;  %v1344_v12 = vld [vmem:[#allocation5 + $0x148] sm:$0xff]  }
  0x4a   :  { %1211 = vmatprep.subr.bf16.mxu1 %v1312_v18  ;;  %v178_v50 = vpack.c.bf16 %v132_v45, %v132_v45  ;;  %v177_v51 = vpack.c.bf16 %v131_v46, %v131_v46  ;;  %v1349_v3 = vld [vmem:[#allocation2 + $0x8] ss:$14 sps:$4 sm:$0xff]   ;;  %v1351_v4 = vld [vmem:[#allocation2 + $0xc] ss:$14 sps:$4 sm:$0x33]   ;;  %v1345_v15 = vld [vmem:[#allocation5 + $0x108] sm:$0xff]  }
  0x4b   :  { %1190 = vmatpush3.bf16.msra.mxu0 %v1311_v17  ;;  %v180_v56 = vpack.c.bf16 %v134_v53, %v134_v53  ;;  %v179_v57 = vpack.c.bf16 %v133_v54, %v133_v54  ;;  %v1354_v6 = vld [vmem:[#allocation2 + $0x28] ss:$14 sps:$4 sm:$0x33]   ;;  %v145_v7 = vrot.slane %v1349_v3, %v1581_v36  ;;  %v152_v8 = vrot.slane %v1351_v4, %v1581_v36  ;;  %v1346_v18 = vld [vmem:[#allocation5 + $0x140] sm:$0xff]   ;;  %v1360_v24 = vld [vmem:[#allocation7 + $0x64] ss:$8 sps:$4 sm:$0xff]  }
  0x4c   :  { %1191 = vmatprep.subr.bf16.mxu0 %v1314_v20  ;;  %619 = vmatprep.mubr.bf16.mxu0 %v178_v50  ;;  %v1343_v9 = vld [vmem:[#allocation5 + $0x110] sm:$0xff]   ;;  %v166_v11 = vrot.slane %v1354_v6, %v1581_v36  ;;  %v1357_v23 = vld [vmem:[#allocation7 + $0x74] ss:$8 sps:$4 sm:$0xff]   ;;  %v1373_v36 = vld [vmem:[#allocation7 + $0x10] ss:$8 sps:$4 sm:$0xff]  }
  0x4d   :  { %1212 = vmatpush3.bf16.msra.mxu1 %v1313_v19  ;;  %659 = vmatprep.mubr.bf16.mxu1 %v180_v56  ;;  %v168_v13 = vcombine.high %v145_v7, %v159_v10  ;;  %v1347_v19 = vld [vmem:[#allocation5 + $0x100] sm:$0xff]   ;;  %v167_v20 = vcombine.low %v145_v7, %v159_v10  ;;  %v1358_v25 = vld [vmem:[#allocation7 + $0x60] ss:$8 sps:$4 sm:$0xff]   ;;  %v1378_v37 = vld [vmem:[#allocation7 + $0x4] ss:$8 sps:$4 sm:$0xff]  }
  0x4e   :  { %1213 = vmatprep.subr.bf16.mxu1 %v1316_v22  ;;  %v169_v14 = vcombine.low %v152_v8, %v166_v11  ;;  %v1355_v22 = vld [vmem:[#allocation7 + $0x70] ss:$8 sps:$4 sm:$0xff]   ;;  %v1369_v30 = vld [vmem:[#allocation7 + $0x34] ss:$8 sps:$4 sm:$0xff]   ;;  %v1376_v38 = vld [vmem:[#allocation7] ss:$8 sps:$4 sm:$0xff]  }
  0x4f   :  { %1192 = vmatpush3.bf16.msra.mxu0 %v1315_v21  ;;  %v182_v16 = vpack.c.bf16 %v168_v13, %v168_v13  ;;  %v181_v21 = vpack.c.bf16 %v167_v20, %v167_v20  ;;  %v1379_v40 = vld [vmem:[#allocation8 + $0x78] sm:$0xff]   ;;  %v1382_v43 = vld [vmem:[#allocation8 + $0x30] sm:$0xff]   ;;  %v1383_v44 = vld [vmem:[#allocation8 + $0x68] sm:$0xff]   ;;  %v773_v20 = vsub.s32 1, %v1578_v31 }
  0x50   :  { %1193 = vmatprep.subr.bf16.mxu0 %v1318_v27  ;;  %v183_v17 = vpack.c.bf16 %v169_v14, %v169_v14  ;;  %v1361_v27 = vld [vmem:[#allocation7 + $0x50] ss:$8 sps:$4 sm:$0xff]   ;;  %v1384_v45 = vld [vmem:[#allocation8 + $0x28] sm:$0xff]   ;;  %v1385_v46 = vld [vmem:[#allocation8 + $0x60] sm:$0xff]  }
  0x51   :  { %1214 = vmatpush3.bf16.msra.mxu1 %v1317_v26  ;;  %v1363_v26 = vld [vmem:[#allocation7 + $0x54] ss:$8 sps:$4 sm:$0xff]   ;;  %v1391_v14 = vld [vmem:[#allocation8 + $0x48] sm:$0xff]  }
  0x52   :  { %1215 = vmatprep.subr.bf16.mxu1 %v1320_v29  ;;  %v1364_v29 = vld [vmem:[#allocation7 + $0x40] ss:$8 sps:$4 sm:$0xff]   ;;  %v1380_v41 = vld [vmem:[#allocation8 + $0x38] sm:$0xff]   ;;  %v1389_v50 = vld [vmem:[#allocation8 + $0x50] sm:$0xff]  }
  0x53   :  { %1194 = vmatpush3.bf16.msra.mxu0 %v1319_v28  ;;  %v1366_v28 = vld [vmem:[#allocation7 + $0x44] ss:$8 sps:$4 sm:$0xff]   ;;  %v1387_v48 = vld [vmem:[#allocation8 + $0x58] sm:$0xff]  }
  0x54   :  { %1195 = vmatprep.subr.bf16.mxu0 %v1322_v33  ;;  %v1370_v33 = vld [vmem:[#allocation7 + $0x20] ss:$8 sps:$4 sm:$0xff]   ;;  %v1388_v49 = vld [vmem:[#allocation8 + $0x18] sm:$0xff]  }
  0x55   :  { %1216 = vmatpush3.bf16.msra.mxu1 %v1321_v32  ;;  %v1367_v32 = vld [vmem:[#allocation7 + $0x30] ss:$8 sps:$4 sm:$0xff]  }
  0x56   :  { %1217 = vmatprep.subr.bf16.mxu1 %v1324_v35  ;;  %v1375_v35 = vld [vmem:[#allocation7 + $0x14] ss:$8 sps:$4 sm:$0xff]  }
  0x57   :  { %1196 = vmatpush3.bf16.msra.mxu0 %v1323_v34  ;;  %v1372_v34 = vld [vmem:[#allocation7 + $0x24] ss:$8 sps:$4 sm:$0xff]  }
  0x58   :  { %1225 = vmatprep.subr.bf16.mxu0 %v1330_v42  ;;  %v1381_v42 = vld [vmem:[#allocation8 + $0x70] sm:$0xff]  }
  0x59   :  { %1218 = vmatpush3.bf16.msra.mxu1 %v1329_v39  ;;  %v1516_v39 = vmov 0  }
  0x5a   :  { %1271 = vmatprep.subr.bf16.mxu1 %v1514_v47  ;;  %620 = vmatmul.mubr.bf16.vlgmr.msra.gmra.mxu0 %v177_v51  ;;  %v1390_v51 = vld [vmem:[#allocation8 + $0x10] sm:$0xff]  }
  0x5b   :  { %1226 = vmatpush3.bf16.msra.mxu0 %v1333_v52  ;;  %699 = vmatprep.mubr.bf16.mxu0 %v182_v16  ;;  %v1393_v16 = vld [vmem:[#allocation8 + $0x40] sm:$0xff]  }
  0x5c   :  { %1227 = vmatprep.subr.bf16.mxu0 %v1334_v55  ;;  %660 = vmatmul.mubr.bf16.vlgmr.msra.gmra.mxu1 %v179_v57 }
  0x5d   :  { %1273 = vmatprep.mubr.msk.bf16.mxu1 %vm1515_vm0, %v1514_v47  ;;  %1272 = vmatpush3.bf16.msra.mxu1 %v1348_v0  ;;  %v1386_v47 = vld [vmem:[#allocation8 + $0x20] sm:$0xff]  }
  0x5e   :  { %857 = vmatprep.subr.bf16.mxu1 %v1357_v23  ;;  %v1097_v0 = vld [vmem:[%s1607_s2] ss:$0 sm:$0xff] }
  0x5f   :  { %1228 = vmatpush3.bf16.msra.mxu0 %v1335_v58 }
  0x60   :  { %1229 = vmatprep.subr.bf16.mxu0 %v1336_v59 }
  0x63   :  { %1230 = vmatpush3.bf16.msra.mxu0 %v1337_v60 }
  0x64   :  { %1231 = vmatprep.subr.bf16.mxu0 %v1338_v61  ;;  %1274 = vmatmul.mubr.msk.bf16.vlgmr.msra.gmra.mxu1 %vm583_vm1, %v183_v17  ;;  %v1394_v17 = vld [vmem:[#allocation8] sm:$0xff]  }
  0x65   :  { %858 = vmatpush1.bf16.msra.mxu1 %v1355_v22  ;;  %889 = vmatprep.mubr.bf16.mxu1 %v1516_v39 }
  0x66   :  { %859 = vmatprep.subr.bf16.mxu1 %v1360_v24 }
  0x67   :  { %1232 = vmatpush3.bf16.msra.mxu0 %v1339_v62 }
  0x68   :  { %1233 = vmatprep.subr.bf16.mxu0 %v1340_v63 }
  0x69   :  { %860 = vmatpush1.bf16.msra.mxu1 %v1358_v25 }
  0x6a   :  { %861 = vmatprep.subr.bf16.mxu1 %v1363_v26 }
  0x6b   :  { %1234 = vmatpush3.bf16.msra.mxu0 %v1341_v1 }
  0x6c   :  { %1235 = vmatprep.subr.bf16.mxu0 %v1342_v2 }
  0x6d   :  { %862 = vmatpush1.bf16.msra.mxu1 %v1361_v27 }
  0x6e   :  { %863 = vmatprep.subr.bf16.mxu1 %v1366_v28 }
  0x6f   :  { %1236 = vmatpush3.bf16.msra.mxu0 %v1343_v9 }
  0x70   :  { %1237 = vmatprep.subr.bf16.mxu0 %v1344_v12 }
  0x71   :  { %864 = vmatpush1.bf16.msra.mxu1 %v1364_v29 }
  0x72   :  { %865 = vmatprep.subr.bf16.mxu1 %v1369_v30 }
  0x73   :  { %1238 = vmatpush3.bf16.msra.mxu0 %v1345_v15  ;;  %v1392_v15 = vld [vmem:[#allocation8 + $0x8] sm:$0xff]  }
  0x74   :  { %1239 = vmatprep.subr.bf16.mxu0 %v1346_v18  ;;  %v769_v18 = vsub.s32 0, %v1578_v31 }
  0x75   :  { %866 = vmatpush1.bf16.msra.mxu1 %v1367_v32 }
  0x76   :  { %867 = vmatprep.subr.bf16.mxu1 %v1372_v34 }
  0x77   :  { %1240 = vmatpush3.bf16.msra.mxu0 %v1347_v19  ;;  %v765_v19 = vld [vmem:[%s1609_s4] sm:$0x3] }
  0x78   :  { %1249 = vmatprep.subr.bf16.mxu0 %v1379_v40  ;;  %v774_v22 = vrot.slane %v765_v19, %v773_v20 }
  0x79   :  { %868 = vmatpush1.bf16.msra.mxu1 %v1370_v33 }
  0x7a   :  { %700 = vmatmul.mubr.bf16.vlgmr.msra.gmra.mxu0 %v181_v21  ;;  %869 = vmatprep.subr.bf16.mxu1 %v1375_v35  ;;  %v770_v21 = vrot.slane %v765_v19, %v769_v18  ;;  %v1164_v35 = vld [vmem:[%s1611_s6] ss:$0 sm:$0xff] }
  0x7b   :  { %1250 = vmatpush3.bf16.msra.mxu0 %v1380_v41 }
  0x7c   :  { %1251 = vmatprep.subr.bf16.mxu0 %v1381_v42 }
  0x7d   :  { %870 = vmatpush1.bf16.msra.mxu1 %v1373_v36 }
  0x7e   :  { %871 = vmatprep.subr.bf16.mxu1 %v1378_v37 }
  0x7f   :  { %1252 = vmatpush3.bf16.msra.mxu0 %v1382_v43 }
  0x80   :  { %1253 = vmatprep.subr.bf16.mxu0 %v1383_v44 }
  0x81   :  { %872 = vmatpush1.bf16.msra.mxu1 %v1376_v38 }
  0x83   :  { %1254 = vmatpush3.bf16.msra.mxu0 %v1384_v45 }
  0x84   :  { %1255 = vmatprep.subr.bf16.mxu0 %v1385_v46 }
  0x87   :  { %1256 = vmatpush3.bf16.msra.mxu0 %v1386_v47 }
  0x88   :  { %1257 = vmatprep.subr.bf16.mxu0 %v1387_v48 }
  0x8b   :  { %1258 = vmatpush3.bf16.msra.mxu0 %v1388_v49 }
  0x8c   :  { %1259 = vmatprep.subr.bf16.mxu0 %v1389_v50 }
  0x8f   :  { %1260 = vmatpush3.bf16.msra.mxu0 %v1390_v51 }
  0x90   :  { %1261 = vmatprep.subr.bf16.mxu0 %v1391_v14 }
  0x93   :  { %1262 = vmatpush3.bf16.msra.mxu0 %v1392_v15 }
  0x94   :  { %1263 = vmatprep.subr.bf16.mxu0 %v1393_v16 }
  0x97   :  { %1264 = vmatpush3.bf16.msra.mxu0 %v1394_v17 }
 0x11a   :  { %v1197_v52 = vpop.f32.mrf.mxu0 }
 0x11c   :  { %v1198_v53 = vpop.f32.mrf.mxu0  ;;  %v1219_v54 = vpop.f32.mrf.mxu1 }
 0x11d   :  { %v1199_v63 = vadd.f32 %v1198_v53, %v1197_v52 }
 0x11e   :  { %v1200_v55 = vpop.f32.mrf.mxu0  ;;  %v1220_v56 = vpop.f32.mrf.mxu1 }
 0x11f   :  { %v622_v2 = vadd.f32 %v1199_v63, %v1097_v0  ;;  %v1221_v3 = vadd.f32 %v1220_v56, %v1219_v54 }
 0x120   :  { %v1201_v57 = vpop.f32.mrf.mxu0  ;;  %v1222_v58 = vpop.f32.mrf.mxu1 }
 0x121   :  { %v662_v6 = vadd.f32 %v1221_v3, %v622_v2 }
 0x122   :  { %v1223_v59 = vpop.f32.mrf.mxu1 }
 0x124   :  { %v741_v60 = vpop.f32.mrf.mxu1 }
 0x126   :  { %v1275_v61 = vpop.f32.mrf.mxu1 }
 0x128   :  { %v744_v62 = vpop.f32.mrf.mxu1 }
 0x12a   :  { %v1276_v1 = vpop.f32.mrf.mxu1 }
 0x13a   :  { %v1241_v4 = vpop.f32.mrf.mxu0 }
 0x13c   :  { %v1242_v5 = vpop.f32.mrf.mxu0 }
 0x13d   :  { %v1243_v7 = vadd.f32 %v1242_v5, %v1241_v4 }
 0x13e   :  { %v1244_v8 = vpop.f32.mrf.mxu0 }
 0x13f   :  { %v702_v9 = vadd.f32 %v1243_v7, %v662_v6 }
 0x140   :  { %v1245_v10 = vpop.f32.mrf.mxu0 }
 0x141   :  { %v742_v11 = vadd.f32 %v741_v60, %v702_v9 }
 0x143   :  { %v747_v12 = vmax.f32 %v742_v11, 0.0 }
 0x145   :  { %v748_v13 = vpack.c.bf16 %v747_v12, %v747_v12 }
 0x147   :  { %890 = vmatmul.mubr.bf16.vlgmr.msra.gmra.mxu1 %v748_v13 }
 0x207   :  { %v891_v23 = vpop.f32.mrf.mxu1 }
 0x208   :  { %v892_v24 = vadd.f32 %v891_v23, %v770_v21 }
 0x209   :  { %v893_v25 = vpop.f32.mrf.mxu1 }
 0x20a   :  { %v894_v26 = vadd.f32 %v893_v25, %v774_v22  ;;  %v898_v27 = vmax.f32 %v892_v24, 0.0 }
 0x20b   :  { %v895_v28 = vpop.f32.mrf.mxu1 }
 0x20c   :  { %v899_v29 = vmax.f32 %v894_v26, 0.0  ;;  %v900_v33 = vpack.c.bf16 %v898_v27, %v898_v27 }
 0x20d   :  { %v896_v30 = vpop.f32.mrf.mxu1 }
 0x20e   :  { %v901_v32 = vpack.c.bf16 %v899_v29, %v899_v29 }
 0x210   :  { %1069 = vmatprep.mubr.bf16.mxu0 %v901_v32 }
 0x211   :  { %1070 = vmatmul.mubr.bf16.vlgmr.msra.gmra.mxu0 %v900_v33 }
 0x2d1   :  { %v1265_v34 = vpop.f32.mrf.mxu0 }
 0x2d3   :  { %v1266_v31 = vpop.f32.mrf.mxu0 }
 0x2d4   :  { %v1267_v36 = vadd.f32 %v1266_v31, %v1265_v34 }
 0x2d5   :  { %v1268_v37 = vpop.f32.mrf.mxu0 }
 0x2d6   :  { %v1072_v38 = vadd.f32 %v1267_v36, %v1164_v35 }
 0x2d7   :  { %v1269_v39 = vpop.f32.mrf.mxu0 }
 0x2d8   :  { %1077 = vst [vmem:[#allocation10] sm:$0xff] %v1072_v38 }
 0x2d9   :  { %1082 = vsyncadd [#allocation4], 96  ;;  %s1517_s4 = smov [#allocation10]  }
 0x2da   :  { %s1083_s29 = sshll.u32 %s1517_s4, 4  ;;  %s1084_s29 = int_to_ptr.vmem [resolvable:$true] %s1083_s29 }
 0x2db   :  { %s1475_s30 = scalar_lea.vmem %s1084_s29, 32  ;;  %s1479_s8 = scalar_lea.vmem %s1084_s29, 128 }
 0x2dc   :  { %p1476_p6 = scmp.ne.s32.totalorder %s1084_s29, %s1475_s30  ;;  %p1480_p7 = scmp.lt.s32.totalorder %s1084_s29, %s1084_s29 }
 0x2dd   :  { %p1481_p8 = scmp.lt.s32.totalorder %s1479_s8, %s1475_s30 }
 0x2df   :  { %p1482_p9 = por %p1481_p8, %p1480_p7 }
 0x2e1   :  { %p1483_p10 = pnand %p1482_p9, %p1476_p6 }
 0x2e3   :  { %1486 = shalt.err (!%p1483_p10)
}
 0x2e4   :  { %s1518_s9 = smov 32   ;;  %s1519_s6 = smov 2  }
 0x2e5   :  { %1089 = dma.vmem_to_hbm [thread:$0]  %s1084_s29, 32, %s1612_s7, [#allocation4], %s1518_s9, %s1518_s9, %s1519_s6  }
 0x2e6   :  { %1501 = dma.done.wait [#allocation4], 128  }
 0x2e7   :  { %1502 = vsyncadd [#allocation4], 4294967168 }
 0x2e8   :  { %1093 = vsyncpa [#allocation3], 1 }
 0x2e9   :  { %1094 = vsyncpa [#allocation6], 1 }
 0x2ea   :  { %1095 = vsyncpa [#allocation9], 1 }
 0x2eb   :  { %1096 = vsyncpa [#allocation4], 1 }

</bundles_post_ra>
